<compile_context>
chip_gen: v5e
topology: v5e:2x2
jax: 0.10.0
libtpu: 0.0.40
codegen_flags: <defaults>
</compile_context>

<pallas_src>
import jax
import jax.numpy as jnp
from jax import lax
from jax.experimental import pallas as pl
from jax.experimental.pallas import tpu as pltpu


def _round_up(x, m):
    return ((x + m - 1) // m) * m


def _cdiv(a, b):
    return (a + b - 1) // b


def _vmem_capacity_bytes():
    """Physical VMEM of the current chip; conservative fallback if unqueryable."""
    try:
        return int(pltpu.get_tpu_info().vmem_capacity_bytes)
    except Exception:
        return 64 * 1024 * 1024  # v7x-class worst case -> safe on every generation


def one_layer_fc_kernel(x_ref, w_ref, b_ref, a_ref, o_ref, acc_ref):
    # x_ref: (tb, tk)    w_ref: (tn, tk)  (PyTorch nn.Linear layout, no transpose)
    # b_ref/a_ref: (1, tn) f32            o_ref: (tb, tn)    acc_ref: (tb, tn) f32
    k = pl.program_id(2)

    @pl.when(k == 0)
    def _():
        acc_ref[...] = jnp.zeros_like(acc_ref)

    # x @ W^T : contract the K (last) axis of both operands, accumulate in f32.
    acc_ref[...] += lax.dot_general(
        x_ref[...], w_ref[...],
        dimension_numbers=(((1,), (1,)), ((), ())),
        preferred_element_type=jnp.float32)

    @pl.when(k == pl.num_programs(2) - 1)
    def _():
        y = acc_ref[...] + b_ref[...]              # bias broadcast over batch rows
        o_ref[...] = jnp.where(y > 0, y, a_ref[...] * y).astype(o_ref.dtype)


def one_layer_fc(x, w, b, alpha, *, tb=512, tn=512, tk=512,
                 compute_dtype=jnp.bfloat16, force_pallas=False):
    """y = PReLU(x @ w.T + b).

    x:     (B, in_dim)        float32
    w:     (out_dim, in_dim)  float32  (PyTorch nn.Linear layout; NOT transposed)
    b:     (out_dim,) or (1, out_dim)
    alpha: scalar (shared PReLU slope) or (out_dim,) per-channel slopes
    compute_dtype: dtype of the matmul operands (accumulation is always f32).
                   Use jnp.float32 (or None) for bit-faithful PyTorch semantics.
    """
    B, K = x.shape
    N, K2 = w.shape
    assert K == K2, "weight in_dim mismatch"
    out_dtype = x.dtype

    b_row = jnp.reshape(jnp.asarray(b, jnp.float32), (1, N))
    a_arr = jnp.asarray(alpha, jnp.float32)
    if a_arr.size == 1:
        a_row = jnp.full((1, N), a_arr.reshape(()), jnp.float32)
    else:
        a_row = jnp.reshape(a_arr, (1, N))

    # --- tiny-problem early exit: launch/padding overhead dominates ----------
    if not force_pallas and B * K * N < (1 << 20):
        y = jnp.dot(x, w.T, precision=lax.Precision.HIGHEST) + b_row
        return jnp.where(y > 0, y, a_row * y).astype(out_dtype)

    cdt = jnp.dtype(compute_dtype) if compute_dtype is not None else jnp.dtype(x.dtype)
    in_bytes = cdt.itemsize
    out_bytes = jnp.dtype(out_dtype).itemsize

    # --- generation-aware VMEM budget ----------------------------------------
    cap = _vmem_capacity_bytes()
    if cap >= 96 * 1024 * 1024:               # v5e / v6e: 128 MiB physical VMEM
        budget, vmem_limit = 80 * 1024 * 1024, 100 * 1024 * 1024
    else:                                     # v7x: 64 MiB per TensorCore
        budget, vmem_limit = 40 * 1024 * 1024, 52 * 1024 * 1024

    # --- tile selection: (8,128)-granular, keep tb / tn large ----------------
    tb_eff = min(tb, _round_up(B, 8))
    tn_eff = min(tn, _round_up(N, 128))
    tk_eff = min(tk, _round_up(K, 128))

    def working_set(tb_, tn_, tk_):
        return (2 * (tb_ * tk_ + tn_ * tk_) * in_bytes   # x + W tiles, double-buffered
                + 2 * 2 * tn_ * 4                        # bias + alpha tiles
                + 2 * tb_ * tn_ * out_bytes              # output tile, double-buffered
                + tb_ * tn_ * 4)                         # f32 accumulator scratch

    while working_set(tb_eff, tn_eff, tk_eff) > budget:
        if tk_eff > 512:                                  # K-tiling absorbs big in_dim
            tk_eff = _round_up(tk_eff // 2, 128)
        elif tn_eff > 256:                                # keep tn >= 256 (MXU width)
            tn_eff = _round_up(tn_eff // 2, 128)
        elif tb_eff > 256:                                # keep tb large (W reuse)
            tb_eff = _round_up(tb_eff // 2, 8)
        elif tk_eff > 128:
            tk_eff = _round_up(tk_eff // 2, 128)
        elif tn_eff > 128:
            tn_eff = _round_up(tn_eff // 2, 128)
        elif tb_eff > 8:
            tb_eff = _round_up(tb_eff // 2, 8)
        else:
            break

    # v7x has 2 TensorCores: avoid a degenerate (1,1) parallel grid if splittable.
    if cap < 96 * 1024 * 1024 and _cdiv(B, tb_eff) * _cdiv(N, tn_eff) == 1:
        if tn_eff > 128:
            tn_eff = max(128, 128 * ((tn_eff // 128) // 2))
        elif tb_eff > 8:
            tb_eff = max(8, 8 * ((tb_eff // 8) // 2))

    B_pad = _round_up(B, tb_eff)
    N_pad = _round_up(N, tn_eff)
    K_pad = _round_up(K, tk_eff)

    # --- wrapper-side padding (no transpose: W stays in (N, K) layout) -------
    x_p = jnp.pad(x, ((0, B_pad - B), (0, K_pad - K))).astype(cdt)
    w_p = jnp.pad(w, ((0, N_pad - N), (0, K_pad - K))).astype(cdt)
    b_p = jnp.pad(b_row, ((0, 0), (0, N_pad - N)))
    a_p = jnp.pad(a_row, ((0, 0), (0, N_pad - N)))

    nb, nn_, nk = B_pad // tb_eff, N_pad // tn_eff, K_pad // tk_eff

    # Grid order: outer axis over the larger operand's independent dim so the
    # smaller operand is the one re-streamed; K (reduction) is innermost.
    if N >= B:                         # weight (K*N) >= activations (B*K): typical FC
        grid = (nn_, nb, nk)
        x_map = lambda j, i, k: (i, k)
        w_map = lambda j, i, k: (j, k)
        v_map = lambda j, i, k: (0, j)
        o_map = lambda j, i, k: (i, j)
    else:
        grid = (nb, nn_, nk)
        x_map = lambda i, j, k: (i, k)
        w_map = lambda i, j, k: (j, k)
        v_map = lambda i, j, k: (0, j)
        o_map = lambda i, j, k: (i, j)

    cost = pl.CostEstimate(
        flops=int(2 * B_pad * K_pad * N_pad),
        transcendentals=0,
        bytes_accessed=int(B_pad * K_pad * in_bytes * nn_     # x streamed per N tile
                           + N_pad * K_pad * in_bytes * nb    # W streamed per batch tile
                           + 2 * N_pad * 4 * nb               # bias + alpha
                           + B_pad * N_pad * out_bytes),      # output written once
    )

    y_p = pl.pallas_call(
        one_layer_fc_kernel,
        out_shape=jax.ShapeDtypeStruct((B_pad, N_pad), out_dtype),
        grid_spec=pltpu.PrefetchScalarGridSpec(
            num_scalar_prefetch=0,
            grid=grid,
            in_specs=[
                pl.BlockSpec((tb_eff, tk_eff), x_map),   # x  (batch, K) tile
                pl.BlockSpec((tn_eff, tk_eff), w_map),   # W  (out, in) tile — no transpose
                pl.BlockSpec((1, tn_eff), v_map),        # bias row tile
                pl.BlockSpec((1, tn_eff), v_map),        # PReLU slope row tile
            ],
            out_specs=pl.BlockSpec((tb_eff, tn_eff), o_map),
            scratch_shapes=[pltpu.VMEM((tb_eff, tn_eff), jnp.float32)],
        ),
        compiler_params=pltpu.CompilerParams(
            dimension_semantics=("parallel", "parallel", "arbitrary"),
            vmem_limit_bytes=int(vmem_limit),
        ),
        cost_estimate=cost,
    )(x_p, w_p, b_p, a_p)

    return y_p[:B, :N]


if __name__ == "__main__":
    key = jax.random.PRNGKey(0)
    kx, kw, kb = jax.random.split(key, 3)

    def ref(x_, w_, b_, a_):
        y = jnp.dot(x_, w_.T, precision=lax.Precision.HIGHEST) + jnp.reshape(b_, (1, -1))
        return jnp.where(y > 0, y, a_ * y)

    alpha = jnp.float32(0.25)          # nn.PReLU default shared slope

    # --- main shape: exercises K-tiling (3 reduction steps) and N padding ----
    B, in_dim, out_dim = 64, 384, 272
    bound = 1.0 / float(jnp.sqrt(jnp.float32(in_dim)))
    w = jax.random.uniform(kw, (out_dim, in_dim), jnp.float32, -bound, bound)
    b = jax.random.uniform(kb, (out_dim,), jnp.float32, -bound, bound)
    x = jax.random.normal(kx, (B, in_dim), jnp.float32)
    y_ref = ref(x, w, b, alpha)

    # f32 (PyTorch-faithful) operand path, tk=128 -> 3 K tiles through the accumulator.
    y_f32 = jax.block_until_ready(
        one_layer_fc(x, w, b, alpha, compute_dtype=jnp.float32, tk=128))
    assert y_f32.shape == (B, out_dim)
    assert jnp.allclose(y_f32, y_ref, atol=1e-3, rtol=1e-3)

    # Default bf16-operand / f32-accumulation path (throughput mode).
    y_bf16 = jax.block_until_ready(one_layer_fc(x, w, b, alpha, tk=128))
    assert jnp.allclose(y_bf16, y_ref, atol=5e-2, rtol=5e-2)

    # --- tiny shape: remainder/padding path forced through the kernel --------
    B2, in2, out2 = 10, 32, 16
    kx2, kw2, kb2 = jax.random.split(kb, 3)
    bound2 = 1.0 / float(jnp.sqrt(jnp.float32(in2)))
    w2 = jax.random.uniform(kw2, (out2, in2), jnp.float32, -bound2, bound2)
    b2 = jax.random.uniform(kb2, (out2,), jnp.float32, -bound2, bound2)
    x2 = jax.random.normal(kx2, (B2, in2), jnp.float32)
    y2_ref = ref(x2, w2, b2, alpha)

    y2 = jax.block_until_ready(
        one_layer_fc(x2, w2, b2, alpha, compute_dtype=jnp.float32, force_pallas=True))
    assert y2.shape == (B2, out2)
    assert jnp.allclose(y2, y2_ref, atol=1e-3, rtol=1e-3)

    # Default tiny-problem early exit (pure XLA path below the crossover).
    y2_fast = jax.block_until_ready(
        one_layer_fc(x2, w2, b2, alpha, compute_dtype=jnp.float32))
    assert jnp.allclose(y2_fast, y2_ref, atol=1e-5, rtol=1e-5)

    print("KERNEL_OK")
</pallas_src>

<mosaic_0001>
module attributes {stable_mosaic.version = 11 : i64} {
  func.func @one_layer_fc_kernel(%arg0: i32, %arg1: i32, %arg2: i32, %arg3: memref<64x128xf32, #tpu.memory_space<vmem>>, %arg4: memref<128x128xf32, #tpu.memory_space<vmem>>, %arg5: memref<1x128xf32, #tpu.memory_space<vmem>>, %arg6: memref<1x128xf32, #tpu.memory_space<vmem>>, %arg7: memref<64x128xf32, #tpu.memory_space<vmem>>, %arg8: memref<64x128xf32, #tpu.memory_space<vmem>>) attributes {dimension_semantics = [#tpu.dimension_semantics<parallel>, #tpu.dimension_semantics<parallel>, #tpu.dimension_semantics<arbitrary>], iteration_bounds = array<i64: 3, 1, 3>, scalar_prefetch = 0 : i64, scratch_operands = 1 : i64, tpu.core_type = #tpu.core_type<tc>, window_params = [{transform_indices = @transform_0, window_bounds = array<i64: 64, 128>}, {transform_indices = @transform_1, window_bounds = array<i64: 128, 128>}, {transform_indices = @transform_2, window_bounds = array<i64: 1, 128>}, {transform_indices = @transform_3, window_bounds = array<i64: 1, 128>}, {transform_indices = @transform_4, window_bounds = array<i64: 64, 128>}]} {
    %c0_i32 = arith.constant 0 : i32
    %0 = arith.cmpi eq, %arg2, %c0_i32 : i32
    %1 = arith.extui %0 : i1 to i32
    %c0_i32_0 = arith.constant 0 : i32
    %2 = arith.cmpi ne, %1, %c0_i32_0 : i32
    scf.if %2 {
      %cst_9 = arith.constant 0.000000e+00 : f32
      %12 = vector.broadcast %cst_9 : f32 to vector<64x128xf32>
      %c0_10 = arith.constant 0 : index
      %c0_11 = arith.constant 0 : index
      %13 = vector.load %arg8[%c0_10, %c0_11] : memref<64x128xf32, #tpu.memory_space<vmem>>, vector<64x128xf32>
      tpu.vector_store %arg8[%c0_10, %c0_11], %12 {strides = array<i32>} : memref<64x128xf32, #tpu.memory_space<vmem>>, vector<64x128xf32>,
    } else {
    }
    %c0 = arith.constant 0 : index
    %c0_1 = arith.constant 0 : index
    %3 = vector.load %arg8[%c0, %c0_1] : memref<64x128xf32, #tpu.memory_space<vmem>>, vector<64x128xf32>
    %c0_2 = arith.constant 0 : index
    %c0_3 = arith.constant 0 : index
    %4 = vector.load %arg3[%c0_2, %c0_3] : memref<64x128xf32, #tpu.memory_space<vmem>>, vector<64x128xf32>
    %c0_4 = arith.constant 0 : index
    %c0_5 = arith.constant 0 : index
    %5 = vector.load %arg4[%c0_4, %c0_5] : memref<128x128xf32, #tpu.memory_space<vmem>>, vector<128x128xf32>
    %cst = arith.constant dense<0.000000e+00> : vector<64x128xf32>
    %6 = tpu.matmul %4, %5, %cst {dimension_numbers = #tpu.dot_dimension_numbers<[1], [1], [0], [0], [0, 0, 1, 0], [], []>} : vector<64x128xf32>, vector<128x128xf32>, vector<64x128xf32> -> vector<64x128xf32>
    %7 = arith.addf %3, %6 : vector<64x128xf32>
    %c0_6 = arith.constant 0 : index
    %c0_7 = arith.constant 0 : index
    %8 = vector.load %arg8[%c0_6, %c0_7] : memref<64x128xf32, #tpu.memory_space<vmem>>, vector<64x128xf32>
    tpu.vector_store %arg8[%c0_6, %c0_7], %7 {strides = array<i32>} : memref<64x128xf32, #tpu.memory_space<vmem>>, vector<64x128xf32>,
    %c2_i32 = arith.constant 2 : i32
    %9 = arith.cmpi eq, %arg2, %c2_i32 : i32
    %10 = arith.extui %9 : i1 to i32
    %c0_i32_8 = arith.constant 0 : i32
    %11 = arith.cmpi ne, %10, %c0_i32_8 : i32
    scf.if %11 {
      %c0_9 = arith.constant 0 : index
      %c0_10 = arith.constant 0 : index
      %12 = vector.load %arg8[%c0_9, %c0_10] : memref<64x128xf32, #tpu.memory_space<vmem>>, vector<64x128xf32>
      %c0_11 = arith.constant 0 : index
      %c0_12 = arith.constant 0 : index
      %13 = vector.load %arg5[%c0_11, %c0_12] : memref<1x128xf32, #tpu.memory_space<vmem>>, vector<1x128xf32>
      %14 = vector.broadcast %13 : vector<1x128xf32> to vector<64x128xf32>
      %15 = arith.addf %12, %14 : vector<64x128xf32>
      %cst_13 = arith.constant 0.000000e+00 : f32
      %16 = vector.broadcast %cst_13 : f32 to vector<64x128xf32>
      %17 = arith.cmpf ogt, %15, %16 : vector<64x128xf32>
      %c0_14 = arith.constant 0 : index
      %c0_15 = arith.constant 0 : index
      %18 = vector.load %arg6[%c0_14, %c0_15] : memref<1x128xf32, #tpu.memory_space<vmem>>, vector<1x128xf32>
      %19 = vector.broadcast %18 : vector<1x128xf32> to vector<64x128xf32>
      %20 = arith.mulf %19, %15 : vector<64x128xf32>
      %21 = arith.select %17, %15, %20 : vector<64x128xi1>, vector<64x128xf32>
      %c0_16 = arith.constant 0 : index
      %c0_17 = arith.constant 0 : index
      %22 = vector.load %arg7[%c0_16, %c0_17] : memref<64x128xf32, #tpu.memory_space<vmem>>, vector<64x128xf32>
      tpu.vector_store %arg7[%c0_16, %c0_17], %21 {strides = array<i32>} : memref<64x128xf32, #tpu.memory_space<vmem>>, vector<64x128xf32>,
    } else {
    }
    return
  }
  func.func @transform_0(%arg0: i32, %arg1: i32, %arg2: i32) -> (i32, i32) {
    %c0_i32 = arith.constant 0 : i32
    return %arg1, %arg2 : i32, i32
  }
  func.func @transform_1(%arg0: i32, %arg1: i32, %arg2: i32) -> (i32, i32) {
    %c0_i32 = arith.constant 0 : i32
    return %arg0, %arg2 : i32, i32
  }
  func.func @transform_2(%arg0: i32, %arg1: i32, %arg2: i32) -> (i32, i32) {
    %c0_i32 = arith.constant 0 : i32
    %c0_i32_0 = arith.constant 0 : i32
    return %c0_i32, %arg0 : i32, i32
  }
  func.func @transform_3(%arg0: i32, %arg1: i32, %arg2: i32) -> (i32, i32) {
    %c0_i32 = arith.constant 0 : i32
    %c0_i32_0 = arith.constant 0 : i32
    return %c0_i32, %arg0 : i32, i32
  }
  func.func @transform_4(%arg0: i32, %arg1: i32, %arg2: i32) -> (i32, i32) {
    %c0_i32 = arith.constant 0 : i32
    return %arg1, %arg0 : i32, i32
  }
}

</mosaic_0001>

<bundles_post_ra>
// kernel: tpu_custom_call.1
= control target key start
LH: loop header
LB: loop body
LE: loop exit
PB: predicated region body
PF: predicated region fallthrough
CT: control target
= control target key end

     0   :  { %s1564_s0 = inlined_call_operand.hbm [shape: f32[64,384], index: 0, kind: input, shape index: {}]   ;;  %s1565_s1 = inlined_call_operand.hbm [shape: f32[384,384], index: 1, kind: input, shape index: {}]   ;;  %s1566_s2 = inlined_call_operand.hbm [shape: f32[1,384], index: 2, kind: input, shape index: {}]   ;;  %s1567_s3 = inlined_call_operand.hbm [shape: f32[1,384], index: 3, kind: input, shape index: {}]   ;;  %s1568_s4 = inlined_call_operand.hbm [shape: f32[64,384], index: 4, kind: output, shape index: {}]  }
   0x1   :  { %1577 = sst [smem:[#allocation27_spill]] %s1564_s0 }
   0x2   :  { %1578 = sst [smem:[#allocation28_spill]] %s1565_s1 }
   0x3   :  { %1579 = sst [smem:[#allocation29_spill]] %s1568_s4 }
   0x4   :  { %9 = vsyncpa [#allocation4], 0 }
   0x5   :  { %11 = vsyncpa [#allocation4 + $0x1], 0 }
   0x6   :  { %12 = vsyncpa [#allocation7], 0 }
   0x7   :  { %14 = vsyncpa [#allocation7 + $0x1], 0 }
   0x8   :  { %15 = vsyncpa [#allocation10], 0 }
   0x9   :  { %17 = vsyncpa [#allocation10 + $0x1], 0 }
   0xa   :  { %18 = vsyncpa [#allocation5], 0 }
   0xb   :  { %20 = vsyncpa [#allocation5 + $0x1], 0  ;;  %s1220_s15 = smov 0   ;;  %s1222_s16 = smov 0  }
   0xc   :  { %s1224_s17 = smov 0   ;;  %s1226_s18 = smov 0  }
   0xd   :  { %s1228_s19 = smov 0   ;;  %s1230_s20 = smov 0  }
   0xe   :  { %s1232_s21 = smov 0   ;;  %s1234_s22 = smov 0  }
   0xf   :  { %s1236_s23 = smov 0   ;;  %s1238_s24 = smov 0  }
  0x10   :  { %s1240_s25 = smov 0   ;;  %s1242_s26 = smov 0  }
  0x11   :  { %s1244_s27 = smov 0   ;;  %s1246_s28 = smov 0  }
  0x12 LB: > { %1580 = sst [smem:[#allocation17_spill]] %s1142_s17  ;;  %s38_s29 = sadd.s32 1, %s1178_s26  ;;  %s1186_s28 = sphi %s1246_s28, %s26_s28   ;;  %s1182_s27 = sphi %s1244_s27, %s1623_s27   ;;  %s1178_s26 = sphi %s1242_s26, %s1622_s26   ;;  %s1174_s25 = sphi %s1240_s25, %s1621_s25   ;;  %s1170_s24 = sphi %s1238_s24, %s1620_s24   ;;  %s1166_s23 = sphi %s1236_s23, %s1609_s23   ;;  %s1162_s22 = sphi %s1234_s22, %s1619_s22   ;;  %s1158_s21 = sphi %s1232_s21, %s1618_s21   ;;  %s1154_s20 = sphi %s1230_s20, %s1607_s20   ;;  %s1150_s19 = sphi %s1228_s19, %s1617_s19   ;;  %s1146_s18 = sphi %s1226_s18, %s1616_s18   ;;  %s1142_s17 = sphi %s1224_s17, %s1605_s17   ;;  %s1138_s16 = sphi %s1222_s16, %s1615_s16   ;;  %s1134_s15 = sphi %s1220_s15, %s1614_s15  }
  0x13   : > { %1581 = sst [smem:[#allocation18_spill]] %s1154_s20  ;;  %s45_s30 = sadd.s32 1, %s1182_s27 }
  0x14   : > { %1582 = sst [smem:[#allocation19_spill]] %s1166_s23  ;;  %p39_p0 = scmp.ge.s32.totalorder %s38_s29, 3 }
  0x15   : > { %1583 = sst [smem:[#allocation20_spill]] %s1174_s25  ;;  %p62_p1 = scmp.eq.s32.totalorder %s1186_s28, 0 }
  0x16   : > { %1584 = sst [smem:[#allocation21_spill]] %s1178_s26  ;;  %s82_s5 = sadd.s32 1, %s1154_s20 }
  0x17   : > { %p89_p2 = scmp.ne.s32.totalorder %s1154_s20, %s1150_s19  ;;  %s1625_s29 = smov (%p39_p0, %s38_s29), 0 }
  0x18   : > { %1585 = sst [smem:[#allocation22_spill]] %s1625_s29  ;;  %s1627_s30 = smov (!%p39_p0, %s45_s30), %s1182_s27 }
  0x19   : > { %s1301_s6 = ssub.s32 %s1178_s26, %s1625_s29  ;;  %p1305_p3 = por %p89_p2, %p62_p1 }
  0x1a   : > { %p47_p4 = scmp.ge.s32.totalorder %s1627_s30, 3  ;;  %p52_p5 = scmp.eq.s32.totalorder %s1301_s6, 0 }
  0x1b   : > { %p95_p6 = scmp.ne.s32.totalorder %s1150_s19, %s1146_s18  ;;  %p1574_p7 = scmp.lt.s32.totalorder %s1186_s28, 9 }
  0x1c   : > { %s1629_s30 = smov (%p47_p4, %s1627_s30), 0  ;;  %s223_s10 = sand.u32 1, %s1186_s28  }
  0x1d   : > { %1587 = sst [smem:[#allocation23_spill]] %s1629_s30  ;;  %s1317_s8 = ssub.s32 %s1182_s27, %s1629_s30 }
  0x1e   : > { %s79_s9 = sor.u32 %s1317_s8, %s1301_s6  ;;  %s225_s11 = sand.u32 1, %s1154_s20  }
  0x1f   : > { %p80_p8 = scmp.eq.s32.totalorder %s79_s9, 0  ;;  %s695_s13 = sshll.u32 %s225_s11, 7 }
  0x20   : > { %s757_s14 = smul.u32 48, %s1182_s27  ;;  %p1331_p9 = pnand %p1574_p7, %p1305_p3 }
  0x21   : > { %s1324_s12 = scalar_select %p80_p8, %s1154_s20, %s82_s5  }
  0x22   : > { %s232_s30 = sadd.s32 %s1178_s26, %s757_s14  ;;  %s227_s4 = scalar_lea.vmem [#allocation6], %s695_s13 }
  0x23   : > { %1588 = sst [smem:[#allocation24_spill]] %s1324_s12  ;;  %s237_s9 = sshll.u32 %s227_s4, 4  ;;  %s238_s9 = int_to_ptr.vmem [resolvable:$true] %s237_s9 }
  0x24   : > { %s698_s25 = sshll.u32 %s232_s30, 3  ;;  %s1590_s1 = sld [smem:[#allocation28_spill]] }
  0x25   : > { %p699_p10 = scmp.ge.s32.totalorder %s1186_s28, 1  ;;  %p279_p11 = scmp.lt.s32.totalorder %s1186_s28, 10 }
  0x26   : > { %s1341_s13 = scalar_lea.sflag [#allocation7], %s223_s10  ;;  %s1188_s4 = smov 384  }
  0x27   : > { %s1189_s14 = smov 128   ;;  %s1190_s30 = smov 8  }
  0x28   : > { %p1346_p12 = pnand %p699_p10, %p279_p11  ;;  %p61_p13 = scmp.ne.s32.totalorder %s1166_s23, %s1162_s22 }
  0x29   : > { %p67_p0 = scmp.ne.s32.totalorder %s1162_s22, %s1158_s21  ;;  %s199_s10 = sand.u32 1, %s1166_s23  }
  0x2a   : > { %s234_s11 = scalar_lea.hbm %s1590_s1, %s698_s25  ;;  %s54_s25 = sadd.s32 1, %s1166_s23 }
  0x2b   : > { %s235_s12 = sshll.u32 %s234_s11, 4  ;;  %s694_s7 = sshll.u32 %s1178_s26, 3  ;;  %s236_s12 = int_to_ptr.hbm [resolvable:$true] %s235_s12 }
  0x2c   : > { %774 = dma.hbm_to_vmem [thread:$0]  (!%p1331_p9), %s236_s12, 2048, %s238_s9, %s1341_s13, %s1188_s4, %s1189_s14, %s1190_s30  }
  0x2d   : > { %s1354_s5 = scalar_select %p52_p5, %s1166_s23, %s54_s25  }
  0x2e   : > { %p63_p2 = por %p62_p1, %p61_p13  ;;  %s693_s29 = sshll.u32 %s199_s10, 6 }
  0x2f   : > { %1592 = sst [smem:[#allocation25_spill]] %s1354_s5  ;;  %s203_s25 = scalar_lea.vmem [#allocation3], %s693_s29 }
  0x30   : > { %s1593_s0 = sld [smem:[#allocation27_spill]]  ;;  %s213_s1 = sshll.u32 %s203_s25, 4  ;;  %s214_s1 = int_to_ptr.vmem [resolvable:$true] %s213_s1 }
  0x31   : > { %p769_p3 = pnand %p1574_p7, %p63_p2  ;;  %s200_s26 = scalar_lea.sflag [#allocation4], %s199_s10 }
  0x32   : > { %s1370_s5 = sadd.s32 4294967295, %s1186_s28   ;;  %p106_p5 = scmp.eq.s32.totalorder %s1317_s8, 0 }
  0x33   : > { %p68_p4 = scmp.eq.s32.totalorder %s1370_s5, 0  ;;  %s108_s12 = sadd.s32 1, %s1142_s17 }
  0x34   : > { %p115_p10 = scmp.ne.s32.totalorder %s1142_s17, %s1138_s16  ;;  %p121_p11 = scmp.ne.s32.totalorder %s1138_s16, %s1134_s15 }
  0x35   : > { %p1379_p8 = por %p68_p4, %p67_p0  ;;  %p1386_p9 = por %p95_p6, %p68_p4 }
  0x36   : > { %s210_s6 = scalar_lea.hbm %s1593_s0, %s694_s7  ;;  %s690_s7 = sadd.s32 4294967294, %s1186_s28  }
  0x37   : > { %s211_s11 = sshll.u32 %s210_s6, 4  ;;  %p173_p13 = scmp.eq.s32.totalorder %s1370_s5, 8  ;;  %s212_s11 = int_to_ptr.hbm [resolvable:$true] %s211_s11 }
  0x38   : > { %771 = dma.hbm_to_vmem [thread:$0]  (!%p769_p3), %s212_s11, 1024, %s214_s1, %s200_s26, %s1188_s4, %s1189_s14, %s1190_s30  }
  0x39   : > { %s1391_s1 = scalar_select %p106_p5, %s1142_s17, %s108_s12  }
  0x3a   : > { %p179_p2 = scmp.eq.s32.totalorder %s690_s7, 8  ;;  %p117_p3 = por %p115_p10, %p62_p1 }
  0x3b   : > { %1596 = sst [smem:[#allocation26_spill]] %s1391_s1  ;;  %p1400_p0 = por %p121_p11, %p68_p4 }
  0x3c   : > { %p1404_p7 = por %p173_p13, %p115_p10  ;;  %p1408_p6 = por %p179_p2, %p121_p11 }
  0x3d   : > { %s249_s8 = sand.u32 1, %s1142_s17   ;;  %s253_s30 = scalar_lea.hbm %s1566_s2, %s1182_s27 }
  0x3e   : > { %s255_s10 = sshll.u32 %s253_s30, 4  ;;  %s250_s6 = scalar_lea.vmem [#allocation8], %s249_s8  ;;  %s256_s10 = int_to_ptr.hbm [resolvable:$true] %s255_s10 }
  0x3f   : > { %s257_s11 = sshll.u32 %s250_s6, 4  ;;  %p1600_p1 = scmp.lt.s32.totalorder %s1186_s28, 9  ;;  %s258_s11 = int_to_ptr.vmem [resolvable:$true] %s257_s11 }
  0x40   : > { %s270_s12 = scalar_lea.hbm %s1567_s3, %s1182_s27  ;;  %s267_s23 = scalar_lea.vmem [#allocation9], %s249_s8 }
  0x41   : > { %p775_p4 = pnand %p1600_p1, %p117_p3  ;;  %s272_s0 = sshll.u32 %s270_s12, 4  ;;  %s273_s0 = int_to_ptr.hbm [resolvable:$true] %s272_s0 }
  0x42   : > { %s274_s1 = sshll.u32 %s267_s23, 4  ;;  %s265_s17 = scalar_lea.sflag [#allocation10], %s249_s8  ;;  %s275_s1 = int_to_ptr.vmem [resolvable:$true] %s274_s1 }
  0x43   : > { %777 = dma.hbm_to_vmem [thread:$0]  (!%p775_p4), %s256_s10, 16, %s258_s11, %s1341_s13  }
  0x44   : > { %780 = dma.hbm_to_vmem [thread:$0]  (!%p775_p4), %s273_s0, 16, %s275_s1, %s265_s17  }
  0x45   : > { %283 = sbr.rel (%p1346_p12) target bundleno = 345 (0x159), region = 36  ;;  %s285_s4 = sand.u32 (!%p1346_p12), 1, %s1162_s22  }
  0x46   : > { %s700_s14 = sshll.u32 (!%p1346_p12), %s285_s4, 6  ;;  %s286_s30 = scalar_lea.sflag (!%p1346_p12), [#allocation4], %s285_s4 }
  0x47   : > { %s1427_s6 = scalar_lea.vmem (!%p1346_p12), [#allocation3], %s700_s14 }
  0x4a   : > { %1113 = dma.done.wait (%p1379_p8), %s286_s30, 1024  }
  0x4b   : > { %1115 = vsyncadd (%p1379_p8), %s286_s30, 4294966272  ;;  %s295_s23 = sand.u32 1, %s1370_s5   ;;  %s297_s0 = sand.u32 1, %s1150_s19  }
  0x4c   : > { %s701_s17 = sshll.u32 %s297_s0, 7  ;;  %s296_s20 = scalar_lea.sflag [#allocation7], %s295_s23 }
  0x4d   : > { %s1435_s13 = scalar_lea.vmem [#allocation6], %s701_s17 }
  0x4e   : > { %1117 = dma.done.wait (%p1386_p9), %s296_s20, 2048  }
  0x4f   : > { %1119 = vsyncadd (%p1386_p9), %s296_s20, 4294965248  ;;  %s1442_s1 = sand.u32 1, %s1138_s16  }
  0x50   : > { %s308_s29 = scalar_lea.vmem [#allocation8], %s1442_s1 }
  0x51   : > { %1121 = dma.done.wait (%p1400_p0), %s296_s20, 16  }
  0x52   : > { %1123 = vsyncadd (%p1400_p0), %s296_s20, 4294967280  ;;  %s315_s5 = scalar_lea.sflag [#allocation10], %s1442_s1  ;;  %s317_s8 = scalar_lea.vmem [#allocation9], %s1442_s1 }
  0x53   : > { %1125 = dma.done.wait (%p1400_p0), %s315_s5, 16  }
  0x54   : > { %1127 = vsyncadd (%p1400_p0), %s315_s5, 4294967280  ;;  %s702_s9 = sshll.u32 %s1442_s1, 6  ;;  %p703_p12 = scmp.ne.s32.totalorder %s1170_s24, 0 }
  0x55   : > { %s1456_s10 = scalar_lea.vmem [#allocation11], %s702_s9 }
  0x56   : > { %362 = sbr.rel (%p703_p12) target bundleno = 100 (0x64), region = 56 }
  0x5b   : > { %v1191_v0 = vmov 0.0  }
  0x5c   : > { %363 = vst [vmem:[#allocation2 + $0x30] sm:$0xff] %v1191_v0 }
  0x5d   : > { %364 = vst [vmem:[#allocation2] sm:$0xff] %v1191_v0 }
  0x5e   : > { %365 = vst [vmem:[#allocation2 + $0x18] sm:$0xff] %v1191_v0 }
  0x5f   : > { %366 = vst [vmem:[#allocation2 + $0x10] sm:$0xff] %v1191_v0 }
  0x60   : > { %367 = vst [vmem:[#allocation2 + $0x8] sm:$0xff] %v1191_v0 }
  0x61   : > { %368 = vst [vmem:[#allocation2 + $0x20] sm:$0xff] %v1191_v0 }
  0x62   : > { %369 = vst [vmem:[#allocation2 + $0x28] sm:$0xff] %v1191_v0 }
  0x63   : > { %370 = vst [vmem:[#allocation2 + $0x38] sm:$0xff] %v1191_v0 }
  0x64 PF: > { %v402_v1 = vld [vmem:[%s1435_s13 + $0x78] sm:$0xff]  ;;  %v401_v2 = vld [vmem:[%s1435_s13 + $0x70] sm:$0xff]  ;;  %v400_v3 = vld [vmem:[%s1435_s13 + $0x68] sm:$0xff]  ;;  %p704_p5 = scmp.ne.s32.totalorder %s1170_s24, 2 }
  0x65   : > { %710 = vmatpush.xpose.msra.mxu2 %v402_v1  ;;  %711 = vmatpush.xpose.msra.mxu3 %v402_v1  ;;  %v399_v4 = vld [vmem:[%s1435_s13 + $0x60] sm:$0xff]  ;;  %v398_v5 = vld [vmem:[%s1435_s13 + $0x58] sm:$0xff]  ;;  %v397_v6 = vld [vmem:[%s1435_s13 + $0x50] sm:$0xff] }
  0x66   : > { %403 = vmatpush.xpose.msra.mxu0 %v402_v1  ;;  %709 = vmatpush.xpose.msra.mxu1 %v402_v1  ;;  %v396_v7 = vld [vmem:[%s1435_s13 + $0x48] sm:$0xff]  ;;  %v395_v8 = vld [vmem:[%s1435_s13 + $0x40] sm:$0xff]  ;;  %v394_v9 = vld [vmem:[%s1435_s13 + $0x38] sm:$0xff] }
  0x67   : > { %v393_v10 = vld [vmem:[%s1435_s13 + $0x30] sm:$0xff]  ;;  %v392_v11 = vld [vmem:[%s1435_s13 + $0x28] sm:$0xff]  ;;  %v391_v12 = vld [vmem:[%s1435_s13 + $0x20] sm:$0xff] }
  0x68   : > { %v390_v13 = vld [vmem:[%s1435_s13 + $0x18] sm:$0xff]  ;;  %v389_v14 = vld [vmem:[%s1435_s13 + $0x10] sm:$0xff]  ;;  %v388_v15 = vld [vmem:[%s1435_s13 + $0x8] sm:$0xff] }
  0x69   : > { %713 = vmatpush.xpose.msra.mxu2 %v401_v2  ;;  %714 = vmatpush.xpose.msra.mxu3 %v401_v2  ;;  %v387_v16 = vld [vmem:[%s1435_s13] sm:$0xff]  ;;  %v385_v18 = vld [vmem:[%s1427_s6 + $0x30] sm:$0xff]  ;;  %v384_v21 = vld [vmem:[%s1427_s6 + $0x28] sm:$0xff] }
  0x6a   : > { %404 = vmatpush.xpose.msra.mxu0 %v401_v2  ;;  %712 = vmatpush.xpose.msra.mxu1 %v401_v2  ;;  %v383_v17 = vld [vmem:[%s1427_s6 + $0x20] sm:$0xff]  ;;  %v381_v20 = vld [vmem:[%s1427_s6 + $0x10] sm:$0xff]  ;;  %v386_v22 = vld [vmem:[%s1427_s6 + $0x38] sm:$0xff] }
  0x6b   : > { %v379_v19 = vld [vmem:[%s1427_s6] sm:$0xff]  ;;  %v380_v23 = vld [vmem:[%s1427_s6 + $0x8] sm:$0xff]  ;;  %v382_v24 = vld [vmem:[%s1427_s6 + $0x18] sm:$0xff] }
  0x6c   : > { %v371_v25 = vld [vmem:[#allocation2 + $0x30] sm:$0xff]  ;;  %v373_v26 = vld [vmem:[#allocation2 + $0x18] sm:$0xff]  ;;  %v375_v31 = vld [vmem:[#allocation2 + $0x8] sm:$0xff] }
  0x6d   : > { %716 = vmatpush.xpose.msra.mxu2 %v400_v3  ;;  %717 = vmatpush.xpose.msra.mxu3 %v400_v3  ;;  %v377_v32 = vld [vmem:[#allocation2 + $0x28] sm:$0xff]  ;;  %v372_v37 = vld [vmem:[#allocation2] sm:$0xff]  ;;  %v374_v38 = vld [vmem:[#allocation2 + $0x10] sm:$0xff] }
  0x6e   : > { %405 = vmatpush.xpose.msra.mxu0 %v400_v3  ;;  %715 = vmatpush.xpose.msra.mxu1 %v400_v3  ;;  %v376_v43 = vld [vmem:[#allocation2 + $0x20] sm:$0xff]  ;;  %v378_v44 = vld [vmem:[#allocation2 + $0x38] sm:$0xff] }
  0x71   : > { %719 = vmatpush.xpose.msra.mxu2 %v399_v4  ;;  %720 = vmatpush.xpose.msra.mxu3 %v399_v4 }
  0x72   : > { %406 = vmatpush.xpose.msra.mxu0 %v399_v4  ;;  %718 = vmatpush.xpose.msra.mxu1 %v399_v4 }
  0x75   : > { %722 = vmatpush.xpose.msra.mxu2 %v398_v5  ;;  %723 = vmatpush.xpose.msra.mxu3 %v398_v5 }
  0x76   : > { %407 = vmatpush.xpose.msra.mxu0 %v398_v5  ;;  %721 = vmatpush.xpose.msra.mxu1 %v398_v5 }
  0x79   : > { %725 = vmatpush.xpose.msra.mxu2 %v397_v6  ;;  %726 = vmatpush.xpose.msra.mxu3 %v397_v6 }
  0x7a   : > { %408 = vmatpush.xpose.msra.mxu0 %v397_v6  ;;  %724 = vmatpush.xpose.msra.mxu1 %v397_v6 }
  0x7d   : > { %728 = vmatpush.xpose.msra.mxu2 %v396_v7  ;;  %729 = vmatpush.xpose.msra.mxu3 %v396_v7 }
  0x7e   : > { %409 = vmatpush.xpose.msra.mxu0 %v396_v7  ;;  %727 = vmatpush.xpose.msra.mxu1 %v396_v7 }
  0x81   : > { %731 = vmatpush.xpose.msra.mxu2 %v395_v8  ;;  %732 = vmatpush.xpose.msra.mxu3 %v395_v8 }
  0x82   : > { %410 = vmatpush.xpose.msra.mxu0 %v395_v8  ;;  %730 = vmatpush.xpose.msra.mxu1 %v395_v8 }
  0x85   : > { %734 = vmatpush.xpose.msra.mxu2 %v394_v9  ;;  %735 = vmatpush.xpose.msra.mxu3 %v394_v9 }
  0x86   : > { %411 = vmatpush.xpose.msra.mxu0 %v394_v9  ;;  %733 = vmatpush.xpose.msra.mxu1 %v394_v9 }
  0x89   : > { %737 = vmatpush.xpose.msra.mxu2 %v393_v10  ;;  %738 = vmatpush.xpose.msra.mxu3 %v393_v10 }
  0x8a   : > { %412 = vmatpush.xpose.msra.mxu0 %v393_v10  ;;  %736 = vmatpush.xpose.msra.mxu1 %v393_v10 }
  0x8d   : > { %740 = vmatpush.xpose.msra.mxu2 %v392_v11  ;;  %741 = vmatpush.xpose.msra.mxu3 %v392_v11 }
  0x8e   : > { %413 = vmatpush.xpose.msra.mxu0 %v392_v11  ;;  %739 = vmatpush.xpose.msra.mxu1 %v392_v11 }
  0x91   : > { %743 = vmatpush.xpose.msra.mxu2 %v391_v12  ;;  %744 = vmatpush.xpose.msra.mxu3 %v391_v12 }
  0x92   : > { %414 = vmatpush.xpose.msra.mxu0 %v391_v12  ;;  %742 = vmatpush.xpose.msra.mxu1 %v391_v12 }
  0x95   : > { %746 = vmatpush.xpose.msra.mxu2 %v390_v13  ;;  %747 = vmatpush.xpose.msra.mxu3 %v390_v13 }
  0x96   : > { %415 = vmatpush.xpose.msra.mxu0 %v390_v13  ;;  %745 = vmatpush.xpose.msra.mxu1 %v390_v13 }
  0x99   : > { %749 = vmatpush.xpose.msra.mxu2 %v389_v14  ;;  %750 = vmatpush.xpose.msra.mxu3 %v389_v14 }
  0x9a   : > { %416 = vmatpush.xpose.msra.mxu0 %v389_v14  ;;  %748 = vmatpush.xpose.msra.mxu1 %v389_v14 }
  0x9d   : > { %752 = vmatpush.xpose.msra.mxu2 %v388_v15  ;;  %753 = vmatpush.xpose.msra.mxu3 %v388_v15 }
  0x9e   : > { %417 = vmatpush.xpose.msra.mxu0 %v388_v15  ;;  %751 = vmatpush.xpose.msra.mxu1 %v388_v15 }
  0xa1   : > { %755 = vmatpush.xpose.msra.mxu2 %v387_v16  ;;  %756 = vmatpush.xpose.msra.mxu3 %v387_v16 }
  0xa2   : > { %418 = vmatpush.xpose.msra.mxu0 %v387_v16  ;;  %754 = vmatpush.xpose.msra.mxu1 %v387_v16 }
  0xa4   : > { %431 = vmatmul.f32.vlgmr.msra.gmra.mxu2 %v383_v17  ;;  %437 = vmatmul.f32.vlgmr.msra.gmra.mxu3 %v385_v18 }
  0xa5   : > { %419 = vmatmul.f32.vlgmr.msra.gmra.mxu0 %v379_v19  ;;  %425 = vmatmul.f32.vlgmr.msra.gmra.mxu1 %v381_v20 }
  0xac   : > { %434 = vmatmul.f32.gmra.mxu2 %v384_v21  ;;  %440 = vmatmul.f32.gmra.mxu3 %v386_v22 }
  0xad   : > { %422 = vmatmul.f32.gmra.mxu0 %v380_v23  ;;  %428 = vmatmul.f32.gmra.mxu1 %v382_v24 }
 0x122   : > { %v420_v27 = vpop.f32.mrf.mxu0  ;;  %v426_v28 = vpop.f32.mrf.mxu1 }
 0x123   : > { %v444_v29 = vadd.f32 %v420_v27, %v371_v25  ;;  %v446_v30 = vadd.f32 %v426_v28, %v373_v26 }
 0x125   : > { %452 = vst [vmem:[#allocation2 + $0x30] sm:$0xff] %v444_v29 }
 0x126   : > { %454 = vst [vmem:[#allocation2 + $0x18] sm:$0xff] %v446_v30 }
 0x127   : > { %v432_v33 = vpop.f32.mrf.mxu2  ;;  %v438_v34 = vpop.f32.mrf.mxu3 }
 0x128   : > { %v448_v35 = vadd.f32 %v432_v33, %v375_v31  ;;  %v450_v36 = vadd.f32 %v438_v34, %v377_v32 }
 0x12a   : > { %456 = vst [vmem:[#allocation2 + $0x8] sm:$0xff] %v448_v35  ;;  %v423_v39 = vpop.f32.mrf.mxu0  ;;  %v429_v40 = vpop.f32.mrf.mxu1 }
 0x12b   : > { %458 = vst [vmem:[#allocation2 + $0x28] sm:$0xff] %v450_v36  ;;  %v445_v41 = vadd.f32 %v423_v39, %v372_v37  ;;  %v447_v42 = vadd.f32 %v429_v40, %v374_v38 }
 0x12d   : > { %453 = vst [vmem:[#allocation2] sm:$0xff] %v445_v41 }
 0x12e   : > { %455 = vst [vmem:[#allocation2 + $0x10] sm:$0xff] %v447_v42 }
 0x12f   : > { %v435_v45 = vpop.f32.mrf.mxu2  ;;  %v441_v46 = vpop.f32.mrf.mxu3  ;;  %463 = sbr.rel (%p704_p5) target bundleno = 322 (0x142), region = 60 }
 0x130   : > { %v449_v47 = vadd.f32 %v435_v45, %v376_v43  ;;  %v451_v48 = vadd.f32 %v441_v46, %v378_v44 }
 0x132   : > { %457 = vst [vmem:[#allocation2 + $0x20] sm:$0xff] %v449_v47 }
 0x133   : > { %459 = vst [vmem:[#allocation2 + $0x38] sm:$0xff] %v451_v48 }
 0x134   : > { %v464_v49 = vld [vmem:[#allocation2 + $0x30] sm:$0xff]  ;;  %v906_v50 = vld [vmem:[%s308_s29] ss:$0 sm:$0xff]  ;;  %v466_v55 = vld [vmem:[#allocation2 + $0x18] sm:$0xff] }
 0x135   : > { %v907_v51 = vld [vmem:[%s317_s8] ss:$0 sm:$0xff]  ;;  %v476_v53 = vadd.f32 %v906_v50, %v464_v49  ;;  %v467_v56 = vld [vmem:[#allocation2 + $0x10] sm:$0xff]  ;;  %v468_v57 = vld [vmem:[#allocation2 + $0x8] sm:$0xff]  ;;  %v478_v58 = vadd.f32 %v906_v50, %v466_v55 }
 0x136   : > { %v465_v52 = vld [vmem:[#allocation2] sm:$0xff]  ;;  %v479_v59 = vadd.f32 %v906_v50, %v467_v56  ;;  %v480_v60 = vadd.f32 %v906_v50, %v468_v57  ;;  %v470_v0 = vld [vmem:[#allocation2 + $0x28] sm:$0xff] }
 0x137   : > { %v477_v54 = vadd.f32 %v906_v50, %v465_v52  ;;  %vm484_vm0 = vcmp.gt.f32.partialorder %v476_v53, 0.0  ;;  %v496_v61 = vmul.f32 %v907_v51, %v476_v53  ;;  %vm486_vm2 = vcmp.gt.f32.partialorder %v478_v58, 0.0 }
 0x138   : > { %v498_v1 = vmul.f32 %v907_v51, %v478_v58  ;;  %vm487_vm3 = vcmp.gt.f32.partialorder %v479_v59, 0.0  ;;  %v499_v2 = vmul.f32 %v907_v51, %v479_v59  ;;  %vm488_vm4 = vcmp.gt.f32.partialorder %v480_v60, 0.0 }
 0x139   : > { %vm485_vm1 = vcmp.gt.f32.partialorder %v477_v54, 0.0  ;;  %v497_v62 = vmul.f32 %v907_v51, %v477_v54  ;;  %v469_v63 = vld [vmem:[#allocation2 + $0x20] sm:$0xff]  ;;  %v504_v4 = vsel %vm484_vm0, %v476_v53, %v496_v61  ;;  %v500_v6 = vmul.f32 %v907_v51, %v480_v60 }
 0x13a   : > { %v471_v3 = vld [vmem:[#allocation2 + $0x38] sm:$0xff]  ;;  %512 = vst [vmem:[%s1456_s10] sm:$0xff] %v504_v4  ;;  %v506_v7 = vsel %vm486_vm2, %v478_v58, %v498_v1  ;;  %v507_v8 = vsel %vm487_vm3, %v479_v59, %v499_v2  ;;  %v481_v9 = vadd.f32 %v906_v50, %v469_v63  ;;  %v482_v10 = vadd.f32 %v906_v50, %v470_v0 }
 0x13b   : > { %v505_v5 = vsel %vm485_vm1, %v477_v54, %v497_v62  ;;  %v508_v11 = vsel %vm488_vm4, %v480_v60, %v500_v6  ;;  %v483_v12 = vadd.f32 %v906_v50, %v471_v3  ;;  %514 = vst [vmem:[%s1456_s10 + $0x10] sm:$0xff] %v506_v7 }
 0x13c   : > { %513 = vst [vmem:[%s1456_s10 + $0x8] sm:$0xff] %v505_v5  ;;  %vm489_vm5 = vcmp.gt.f32.partialorder %v481_v9, 0.0  ;;  %v501_v13 = vmul.f32 %v907_v51, %v481_v9  ;;  %vm490_vm6 = vcmp.gt.f32.partialorder %v482_v10, 0.0  ;;  %v502_v14 = vmul.f32 %v907_v51, %v482_v10 }
 0x13d   : > { %515 = vst [vmem:[%s1456_s10 + $0x18] sm:$0xff] %v507_v8  ;;  %vm491_vm7 = vcmp.gt.f32.partialorder %v483_v12, 0.0  ;;  %v503_v15 = vmul.f32 %v907_v51, %v483_v12 }
 0x13e   : > { %516 = vst [vmem:[%s1456_s10 + $0x20] sm:$0xff] %v508_v11  ;;  %v509_v16 = vsel %vm489_vm5, %v481_v9, %v501_v13  ;;  %v510_v17 = vsel %vm490_vm6, %v482_v10, %v502_v14 }
 0x13f   : > { %517 = vst [vmem:[%s1456_s10 + $0x28] sm:$0xff] %v509_v16  ;;  %v511_v18 = vsel %vm491_vm7, %v483_v12, %v503_v15 }
 0x140   : > { %518 = vst [vmem:[%s1456_s10 + $0x30] sm:$0xff] %v510_v17 }
 0x141   : > { %519 = vst [vmem:[%s1456_s10 + $0x38] sm:$0xff] %v511_v18 }
 0x142 PF: > { %s1601_s24 = sld [smem:[#allocation20_spill]]  ;;  %s535_s4 = sshll.u32 %s1456_s10, 4  ;;  %s536_s4 = int_to_ptr.vmem [resolvable:$true] %s535_s4 }
 0x143   : > { %s1602_s7 = sld [smem:[#allocation29_spill]]  ;;  %s521_s30 = scalar_lea.sflag [#allocation5], %s1442_s1 }
 0x148   : > { %s706_s21 = sshll.u32 %s1601_s24, 3 }
 0x149   : > { %s534_s12 = scalar_lea.hbm %s1602_s7, %s706_s21  ;;  %s1048_s20 = scalar_lea.hbm %s1602_s7, 192 }
 0x14a   : > { %s537_s14 = sshll.u32 %s534_s12, 4  ;;  %s538_s14 = int_to_ptr.hbm [resolvable:$true] %s537_s14 }
 0x14b   : > { %s1042_s6 = sshra.s32 %s538_s14, 4  ;;  %s1043_s6 = int_to_ptr.hbm [resolvable:$true] %s1042_s6 }
 0x14c   : > { %s1044_s23 = scalar_lea.hbm %s1043_s6, 64  ;;  %p1049_p11 = scmp.lt.s32.totalorder %s1043_s6, %s1602_s7 }
 0x14d   : > { %p1045_p8 = scmp.ne.s32.totalorder %s1043_s6, %s1044_s23  ;;  %p1050_p13 = scmp.lt.s32.totalorder %s1048_s20, %s1044_s23 }
 0x14f   : > { %p1046_p9 = pnand %p1045_p8, %p1404_p7  ;;  %p1051_p2 = por %p1050_p13, %p1049_p11 }
 0x151   : > { %p1047_p10 = pneg %p1046_p9 }
 0x153   : > { %p1052_p3 = pnand %p1051_p2, %p1047_p10 }
 0x155   : > { %1055 = shalt.err (!%p1052_p3)
}
 0x156   : > { %s1192_s1 = smov 128   ;;  %s1193_s5 = smov 384  }
 0x157   : > { %s1194_s8 = smov 8  }
 0x158   : > { %766 = dma.vmem_to_hbm [thread:$0]  (%p1404_p7), %s536_s4, 1024, %s538_s14, %s521_s30, %s1192_s1, %s1193_s5, %s1194_s8  }
 0x159 PF: > { %p786_p0 = scmp.ge.s32.totalorder %s1186_s28, 2  ;;  %s552_s9 = sand.u32 1, %s1134_s15  }
 0x15a   : > { %s553_s10 = scalar_lea.sflag [#allocation5], %s552_s9 }
 0x15b   : > { %p782_p1 = pnand %p786_p0, %p1408_p6 }
 0x15d   : > { %p783_p4 = pneg %p782_p1 }
 0x15f   : > { %1129 = dma.done.wait (%p783_p4), %s553_s10, 1024  }
 0x160   : > { %1131 = vsyncadd (%p783_p4), %s553_s10, 4294966272  ;;  %s26_s28 = sadd.s32 1, %s1186_s28   ;;  %s1604_s18 = sld [smem:[#allocation17_spill]] }
 0x161   : > { %p1517_p12 = scmp.ge.s32.totalorder %s26_s28, 11   ;;  %s1605_s17 = sld [smem:[#allocation26_spill]] }
 0x162   : > { %s1606_s21 = sld [smem:[#allocation18_spill]]  ;;  %s1614_s15 = smov %s1138_s16 }
 0x163   : > { %s1607_s20 = sld [smem:[#allocation24_spill]]  ;;  %s1621_s25 = smov %s1182_s27 }
 0x164   : > { %s1608_s11 = sld [smem:[#allocation19_spill]] }
 0x165   : > { %s1609_s23 = sld [smem:[#allocation25_spill]] }
 0x166   : > { %s1610_s26 = sld [smem:[#allocation21_spill]]  ;;  %s1615_s16 = smov %s1604_s18 }
 0x167   : > { %s1611_s12 = sld [smem:[#allocation22_spill]]  ;;  %s1616_s18 = smov %s1150_s19 }
 0x168   : > { %s1612_s4 = sld [smem:[#allocation23_spill]]  ;;  %s1617_s19 = smov %s1606_s21 }
 0x169   : > { %s1618_s21 = smov %s1162_s22 }
 0x16a   : > { %s1619_s22 = smov %s1608_s11  ;;  %25 = sbr.rel (!%p1517_p12) target bundleno = 18 (0x12), region = 126 }
 0x16c   : > { %s1620_s24 = smov %s1610_s26 }
 0x16d   : > { %s1622_s26 = smov %s1611_s12 }
 0x16e   : > { %s1623_s27 = smov %s1612_s4 }
 0x16f   :  { %559 = vsyncpa [#allocation4], 1 }
 0x170   :  { %561 = vsyncpa [#allocation4 + $0x1], 1 }
 0x171   :  { %562 = vsyncpa [#allocation7], 1 }
 0x172   :  { %564 = vsyncpa [#allocation7 + $0x1], 1 }
 0x173   :  { %565 = vsyncpa [#allocation10], 1 }
 0x174   :  { %567 = vsyncpa [#allocation10 + $0x1], 1 }
 0x175   :  { %568 = vsyncpa [#allocation5], 1 }
 0x176   :  { %570 = vsyncpa [#allocation5 + $0x1], 1 }

</bundles_post_ra>
